<compile_context>
chip_gen: v6e
topology: v6e:2x2x1
jax: 0.10.0
libtpu: 0.0.40
codegen_flags: <defaults>
</compile_context>

<pallas_src>
import functools
import math

import jax
import jax.numpy as jnp
from jax.experimental import pallas as pl
from jax.experimental.pallas import tpu as pltpu


_VMEM_LIMIT = 48 * 1024 * 1024
_K_TILE_CANDIDATES = (1024, 896, 768, 640, 512, 384, 256, 128)
_N_TILE_CANDIDATES = (768, 640, 512, 384, 256, 128)


def _round_up(a, b):
    return (a + b - 1) // b * b


def _pick_tile(padded, candidates):
    for c in candidates:
        if padded % c == 0:
            return c
    return candidates[-1]


def _choose_k(K):
    Kp = _round_up(K, 128)
    tk = _pick_tile(Kp, _K_TILE_CANDIDATES)
    if tk <= 256 and Kp > 1024:
        # Avoid long chains of tiny K steps: pad a little more, use tk=512.
        Kp = _round_up(K, 512)
        tk = 512
    return Kp, tk


# -----------------------------------------------------------------------------
# Pallas GEMM kernel: out = [relu]( (lhs @ rhs) * scale + bias )
# bf16 MXU operands, f32 accumulator, f32 epilogue.
# -----------------------------------------------------------------------------
def _make_gemm_kernel(apply_relu):
    def kernel(x_ref, w_ref, s_ref, b_ref, o_ref, acc_ref):
        @pl.when(pl.program_id(2) == 0)
        def _init():
            acc_ref[...] = jnp.zeros_like(acc_ref)

        acc_ref[...] += jnp.dot(x_ref[...], w_ref[...],
                                preferred_element_type=jnp.float32)

        @pl.when(pl.program_id(2) == pl.num_programs(2) - 1)
        def _finalize():
            y = acc_ref[...] * s_ref[...] + b_ref[...]
            if apply_relu:
                y = jnp.maximum(y, 0.0)
            o_ref[...] = y.astype(o_ref.dtype)

    return kernel


def _gemm_scale_bias(lhs, rhs, scale, bias, *, apply_relu, out_dtype):
    # lhs: [M, K], rhs: [K, N], scale/bias: [N]
    M, K = lhs.shape
    K2, N = rhs.shape
    assert K == K2

    Kp, tk = _choose_k(K)
    Np = _round_up(N, 128)
    tn = _pick_tile(Np, _N_TILE_CANDIDATES)
    Mp = _round_up(M, 16)          # bf16 sublane packing -> multiples of 16
    if Mp <= 640:
        tm = Mp                    # single M tile for small / late-stage GEMMs
    else:
        tm = 512
        Mp = _round_up(M, tm)

    lhs = lhs.astype(jnp.bfloat16)
    rhs = rhs.astype(jnp.bfloat16)
    if (Mp, Kp) != (M, K):
        lhs = jnp.pad(lhs, ((0, Mp - M), (0, Kp - K)))
    if (Kp, Np) != (K, N):
        rhs = jnp.pad(rhs, ((0, Kp - K), (0, Np - N)))
    s_p = jnp.pad(scale.astype(jnp.float32), (0, Np - N)).reshape(1, Np)
    b_p = jnp.pad(bias.astype(jnp.float32), (0, Np - N)).reshape(1, Np)

    out_bytes = jnp.dtype(out_dtype).itemsize
    cost = pl.CostEstimate(
        flops=2 * Mp * Kp * Np,
        transcendentals=0,
        bytes_accessed=Mp * Kp * 2 + Kp * Np * 2 + Mp * Np * out_bytes + 2 * Np * 4,
    )

    out = pl.pallas_call(
        _make_gemm_kernel(apply_relu),
        out_shape=jax.ShapeDtypeStruct((Mp, Np), out_dtype),
        grid_spec=pltpu.PrefetchScalarGridSpec(
            num_scalar_prefetch=0,
            grid=(Mp // tm, Np // tn, Kp // tk),
            in_specs=[
                pl.BlockSpec((tm, tk), lambda i, j, k: (i, k)),
                pl.BlockSpec((tk, tn), lambda i, j, k: (k, j)),
                pl.BlockSpec((1, tn), lambda i, j, k: (0, j)),
                pl.BlockSpec((1, tn), lambda i, j, k: (0, j)),
            ],
            out_specs=pl.BlockSpec((tm, tn), lambda i, j, k: (i, j)),
            scratch_shapes=[pltpu.VMEM((tm, tn), jnp.float32)],
        ),
        compiler_params=pltpu.CompilerParams(
            dimension_semantics=("parallel", "parallel", "arbitrary"),
            vmem_limit_bytes=_VMEM_LIMIT),
        cost_estimate=cost,
    )(lhs, rhs, s_p, b_p)
    return out[:M, :N]


# -----------------------------------------------------------------------------
# Conv2d + BatchNorm(eval) + ReLU, NHWC.  1x1 convs are pure GEMMs; other
# kernels use im2col (K ordered as (kh, kw, in_c)).
# -----------------------------------------------------------------------------
@functools.partial(jax.jit, static_argnames=("stride", "padding"))
def conv_bn_relu_nhwc(x, w, scale, bias, *, stride, padding):
    # x: [N, H, W, C] bf16, w: [KH, KW, IC, OC] bf16
    KH, KW, IC, OC = w.shape
    N, H, W, C = x.shape
    sh, sw = stride
    ph, pw = padding
    OH = (H + 2 * ph - KH) // sh + 1
    OW = (W + 2 * pw - KW) // sw + 1

    if KH == 1 and KW == 1 and stride == (1, 1) and padding == (0, 0):
        patches = x.reshape(N * H * W, C)
    else:
        # TODO(synk): im2col patches are still materialized by XLA (kh*kw x HBM
        # blow-up); fully fusing the patch reads into the GEMM index_map is the
        # remaining optimization.
        xp = jnp.pad(x, ((0, 0), (ph, ph), (pw, pw), (0, 0)))
        cols = []
        for dy in range(KH):
            for dx in range(KW):
                cols.append(jax.lax.slice(
                    xp,
                    (0, dy, dx, 0),
                    (N, dy + (OH - 1) * sh + 1, dx + (OW - 1) * sw + 1, C),
                    (1, sh, sw, 1)))
        patches = jnp.concatenate(cols, axis=-1).reshape(N * OH * OW, KH * KW * C)

    rhs = w.reshape(KH * KW * IC, OC)
    out = _gemm_scale_bias(patches, rhs, scale, bias,
                           apply_relu=True, out_dtype=jnp.bfloat16)
    return out.reshape(N, OH, OW, OC)


def basic_conv(x, p):
    return conv_bn_relu_nhwc(x, p["w"], p["scale"], p["bias"],
                             stride=p["stride"], padding=p["padding"])


def fused_1x1(x, plist):
    """Run several sibling 1x1 BasicConv2d's (same input) as one wide GEMM."""
    w = jnp.concatenate([p["w"] for p in plist], axis=-1)
    s = jnp.concatenate([p["scale"] for p in plist])
    b = jnp.concatenate([p["bias"] for p in plist])
    y = conv_bn_relu_nhwc(x, w, s, b, stride=(1, 1), padding=(0, 0))
    outs, off = [], 0
    for p in plist:
        oc = p["w"].shape[-1]
        outs.append(y[..., off:off + oc])
        off += oc
    return outs


@jax.jit
def linear(x, w, b):
    # x: [N, IN] bf16, w: [IN, OUT] bf16, b: [OUT] f32
    ones = jnp.ones((w.shape[1],), jnp.float32)
    return _gemm_scale_bias(x, w, ones, b, apply_relu=False, out_dtype=jnp.float32)


# -----------------------------------------------------------------------------
# Pallas pooling kernels (NHWC, no kh*kw slab materialization).
# -----------------------------------------------------------------------------
def _avg_pool_3x3_kernel(x_ref, o_ref):
    # x_ref: (1, H+2, W+2, C), o_ref: (1, H, W, C).  count_include_pad=True.
    oh = o_ref.shape[1]
    ow = o_ref.shape[2]
    x = x_ref[0].astype(jnp.float32)
    acc = None
    for dy in range(3):
        for dx in range(3):
            win = x[dy:dy + oh, dx:dx + ow, :]
            acc = win if acc is None else acc + win
    o_ref[0] = (acc * (1.0 / 9.0)).astype(o_ref.dtype)


@jax.jit
def avg_pool_3x3_s1_p1(x):
    # F.avg_pool2d(kernel_size=3, stride=1, padding=1)
    N, H, W, C = x.shape
    xp = jnp.pad(x, ((0, 0), (1, 1), (1, 1), (0, 0)))
    return pl.pallas_call(
        _avg_pool_3x3_kernel,
        out_shape=jax.ShapeDtypeStruct((N, H, W, C), x.dtype),
        grid_spec=pltpu.PrefetchScalarGridSpec(
            num_scalar_prefetch=0,
            grid=(N,),
            in_specs=[pl.BlockSpec((1, H + 2, W + 2, C), lambda n: (n, 0, 0, 0))],
            out_specs=pl.BlockSpec((1, H, W, C), lambda n: (n, 0, 0, 0)),
        ),
        compiler_params=pltpu.CompilerParams(
            dimension_semantics=("parallel",),
            vmem_limit_bytes=_VMEM_LIMIT),
    )(xp)


def _max_pool_3x3_s2_kernel(ee_ref, eo_ref, oe_ref, oo_ref, o_ref):
    # even/odd row-and-column phases of the input; window (oh, ow) covers
    # rows {2oh, 2oh+1, 2oh+2} x cols {2ow, 2ow+1, 2ow+2}.
    oh = o_ref.shape[1]
    ow = o_ref.shape[2]
    ee = ee_ref[0]
    eo = eo_ref[0]
    oe = oe_ref[0]
    oo = oo_ref[0]
    m = ee[0:oh, 0:ow, :]
    m = jnp.maximum(m, ee[0:oh, 1:ow + 1, :])
    m = jnp.maximum(m, ee[1:oh + 1, 0:ow, :])
    m = jnp.maximum(m, ee[1:oh + 1, 1:ow + 1, :])
    m = jnp.maximum(m, eo[0:oh, 0:ow, :])
    m = jnp.maximum(m, eo[1:oh + 1, 0:ow, :])
    m = jnp.maximum(m, oe[0:oh, 0:ow, :])
    m = jnp.maximum(m, oe[0:oh, 1:ow + 1, :])
    m = jnp.maximum(m, oo[0:oh, 0:ow, :])
    o_ref[0] = m


@jax.jit
def max_pool_3x3_s2(x):
    # F.max_pool2d(kernel_size=3, stride=2), no padding.
    N, H, W, C = x.shape
    OH = (H - 3) // 2 + 1
    OW = (W - 3) // 2 + 1
    ee = x[:, 0:2 * OH + 1:2, 0:2 * OW + 1:2, :]   # (N, OH+1, OW+1, C)
    eo = x[:, 0:2 * OH + 1:2, 1:2 * OW:2, :]       # (N, OH+1, OW,   C)
    oe = x[:, 1:2 * OH:2, 0:2 * OW + 1:2, :]       # (N, OH,   OW+1, C)
    oo = x[:, 1:2 * OH:2, 1:2 * OW:2, :]           # (N, OH,   OW,   C)
    return pl.pallas_call(
        _max_pool_3x3_s2_kernel,
        out_shape=jax.ShapeDtypeStruct((N, OH, OW, C), x.dtype),
        grid_spec=pltpu.PrefetchScalarGridSpec(
            num_scalar_prefetch=0,
            grid=(N,),
            in_specs=[
                pl.BlockSpec((1, OH + 1, OW + 1, C), lambda n: (n, 0, 0, 0)),
                pl.BlockSpec((1, OH + 1, OW, C), lambda n: (n, 0, 0, 0)),
                pl.BlockSpec((1, OH, OW + 1, C), lambda n: (n, 0, 0, 0)),
                pl.BlockSpec((1, OH, OW, C), lambda n: (n, 0, 0, 0)),
            ],
            out_specs=pl.BlockSpec((1, OH, OW, C), lambda n: (n, 0, 0, 0)),
        ),
        compiler_params=pltpu.CompilerParams(
            dimension_semantics=("parallel",),
            vmem_limit_bytes=_VMEM_LIMIT),
    )(ee, eo, oe, oo)


def _global_avg_pool_kernel(x_ref, o_ref):
    # x_ref: (N, H*W, C), o_ref: (N, C)
    x = x_ref[...].astype(jnp.float32)
    o_ref[...] = (jnp.sum(x, axis=1) * (1.0 / x_ref.shape[1])).astype(o_ref.dtype)


@jax.jit
def global_avg_pool(x):
    # F.avg_pool2d(kernel_size=8) on an 8x8 map == global spatial mean.
    N, H, W, C = x.shape
    xr = x.reshape(N, H * W, C)
    return pl.pallas_call(
        _global_avg_pool_kernel,
        out_shape=jax.ShapeDtypeStruct((N, C), x.dtype),
    )(xr)


# -----------------------------------------------------------------------------
# Parameter construction (deterministic, matches torchvision Inception3 shapes)
# -----------------------------------------------------------------------------
class KeyGen:
    def __init__(self, seed):
        self._key = jax.random.PRNGKey(seed)

    def __call__(self):
        self._key, k = jax.random.split(self._key)
        return k


def trunc_normal(key, shape, stddev):
    return jax.random.truncated_normal(key, -2.0, 2.0, shape, jnp.float32) * stddev


def conv_params(kg, in_c, out_c, kernel, stride=1, padding=0, stddev=0.1):
    if isinstance(kernel, int):
        kernel = (kernel, kernel)
    if isinstance(stride, int):
        stride = (stride, stride)
    if isinstance(padding, int):
        padding = (padding, padding)
    kh, kw = kernel
    # Stored as [KH, KW, IC, OC] bf16 (GEMM RHS layout).
    w = trunc_normal(kg(), (kh, kw, in_c, out_c), stddev).astype(jnp.bfloat16)
    # BatchNorm2d(eps=1e-3), eval: gamma=1, beta=0, running_mean=0, running_var=1.
    gamma = jnp.ones((out_c,), jnp.float32)
    beta = jnp.zeros((out_c,), jnp.float32)
    r_mean = jnp.zeros((out_c,), jnp.float32)
    r_var = jnp.ones((out_c,), jnp.float32)
    scale = gamma / jnp.sqrt(r_var + 1e-3)
    bias = beta - r_mean * scale
    return dict(w=w, scale=scale, bias=bias, stride=stride, padding=padding)


def inception_a_params(kg, in_c, pool_features):
    return dict(
        branch1x1=conv_params(kg, in_c, 64, 1),
        branch5x5_1=conv_params(kg, in_c, 48, 1),
        branch5x5_2=conv_params(kg, 48, 64, 5, padding=2),
        branch3x3dbl_1=conv_params(kg, in_c, 64, 1),
        branch3x3dbl_2=conv_params(kg, 64, 96, 3, padding=1),
        branch3x3dbl_3=conv_params(kg, 96, 96, 3, padding=1),
        branch_pool=conv_params(kg, in_c, pool_features, 1),
    )


def inception_b_params(kg, in_c):
    return dict(
        branch3x3=conv_params(kg, in_c, 384, 3, stride=2),
        branch3x3dbl_1=conv_params(kg, in_c, 64, 1),
        branch3x3dbl_2=conv_params(kg, 64, 96, 3, padding=1),
        branch3x3dbl_3=conv_params(kg, 96, 96, 3, stride=2),
    )


def inception_c_params(kg, in_c, c7):
    return dict(
        branch1x1=conv_params(kg, in_c, 192, 1),
        branch7x7_1=conv_params(kg, in_c, c7, 1),
        branch7x7_2=conv_params(kg, c7, c7, (1, 7), padding=(0, 3)),
        branch7x7_3=conv_params(kg, c7, 192, (7, 1), padding=(3, 0)),
        branch7x7dbl_1=conv_params(kg, in_c, c7, 1),
        branch7x7dbl_2=conv_params(kg, c7, c7, (7, 1), padding=(3, 0)),
        branch7x7dbl_3=conv_params(kg, c7, c7, (1, 7), padding=(0, 3)),
        branch7x7dbl_4=conv_params(kg, c7, c7, (7, 1), padding=(3, 0)),
        branch7x7dbl_5=conv_params(kg, c7, 192, (1, 7), padding=(0, 3)),
        branch_pool=conv_params(kg, in_c, 192, 1),
    )


def inception_d_params(kg, in_c):
    return dict(
        branch3x3_1=conv_params(kg, in_c, 192, 1),
        branch3x3_2=conv_params(kg, 192, 320, 3, stride=2),
        branch7x7x3_1=conv_params(kg, in_c, 192, 1),
        branch7x7x3_2=conv_params(kg, 192, 192, (1, 7), padding=(0, 3)),
        branch7x7x3_3=conv_params(kg, 192, 192, (7, 1), padding=(3, 0)),
        branch7x7x3_4=conv_params(kg, 192, 192, 3, stride=2),
    )


def inception_e_params(kg, in_c):
    return dict(
        branch1x1=conv_params(kg, in_c, 320, 1),
        branch3x3_1=conv_params(kg, in_c, 384, 1),
        branch3x3_2a=conv_params(kg, 384, 384, (1, 3), padding=(0, 1)),
        branch3x3_2b=conv_params(kg, 384, 384, (3, 1), padding=(1, 0)),
        branch3x3dbl_1=conv_params(kg, in_c, 448, 1),
        branch3x3dbl_2=conv_params(kg, 448, 384, 3, padding=1),
        branch3x3dbl_3a=conv_params(kg, 384, 384, (1, 3), padding=(0, 1)),
        branch3x3dbl_3b=conv_params(kg, 384, 384, (3, 1), padding=(1, 0)),
        branch_pool=conv_params(kg, in_c, 192, 1),
    )


def make_params(num_classes=1000, seed=42):
    kg = KeyGen(seed)
    P = {}
    P["Conv2d_1a_3x3"] = conv_params(kg, 3, 32, 3, stride=2)
    P["Conv2d_2a_3x3"] = conv_params(kg, 32, 32, 3)
    P["Conv2d_2b_3x3"] = conv_params(kg, 32, 64, 3, padding=1)
    P["Conv2d_3b_1x1"] = conv_params(kg, 64, 80, 1)
    P["Conv2d_4a_3x3"] = conv_params(kg, 80, 192, 3)
    P["Mixed_5b"] = inception_a_params(kg, 192, 32)
    P["Mixed_5c"] = inception_a_params(kg, 256, 64)
    P["Mixed_5d"] = inception_a_params(kg, 288, 64)
    P["Mixed_6a"] = inception_b_params(kg, 288)
    P["Mixed_6b"] = inception_c_params(kg, 768, 128)
    P["Mixed_6c"] = inception_c_params(kg, 768, 160)
    P["Mixed_6d"] = inception_c_params(kg, 768, 160)
    P["Mixed_6e"] = inception_c_params(kg, 768, 192)
    # TODO(synk): InceptionAux params omitted — aux branch only runs when training=True.
    P["Mixed_7a"] = inception_d_params(kg, 768)
    P["Mixed_7b"] = inception_e_params(kg, 1280)
    P["Mixed_7c"] = inception_e_params(kg, 2048)
    fc_w = trunc_normal(kg(), (2048, num_classes), 0.1).astype(jnp.bfloat16)
    bnd = 1.0 / math.sqrt(2048.0)
    fc_b = jax.random.uniform(kg(), (num_classes,), jnp.float32, -bnd, bnd)
    P["fc"] = dict(w=fc_w, b=fc_b)
    return P


# -----------------------------------------------------------------------------
# Inception module forwards (NHWC, channel-last concat)
# -----------------------------------------------------------------------------
def inception_a(x, P):
    b1, b5, b3 = fused_1x1(x, [P["branch1x1"], P["branch5x5_1"], P["branch3x3dbl_1"]])
    b5 = basic_conv(b5, P["branch5x5_2"])
    b3 = basic_conv(basic_conv(b3, P["branch3x3dbl_2"]), P["branch3x3dbl_3"])
    bp = basic_conv(avg_pool_3x3_s1_p1(x), P["branch_pool"])
    return jnp.concatenate([b1, b5, b3, bp], axis=-1)


def inception_b(x, P):
    b3 = basic_conv(x, P["branch3x3"])
    bd = basic_conv(basic_conv(basic_conv(x, P["branch3x3dbl_1"]),
                               P["branch3x3dbl_2"]), P["branch3x3dbl_3"])
    bp = max_pool_3x3_s2(x)
    return jnp.concatenate([b3, bd, bp], axis=-1)


def inception_c(x, P):
    b1, b7, bd = fused_1x1(x, [P["branch1x1"], P["branch7x7_1"], P["branch7x7dbl_1"]])
    b7 = basic_conv(basic_conv(b7, P["branch7x7_2"]), P["branch7x7_3"])
    for name in ("branch7x7dbl_2", "branch7x7dbl_3", "branch7x7dbl_4", "branch7x7dbl_5"):
        bd = basic_conv(bd, P[name])
    bp = basic_conv(avg_pool_3x3_s1_p1(x), P["branch_pool"])
    return jnp.concatenate([b1, b7, bd, bp], axis=-1)


def inception_d(x, P):
    b3, b7 = fused_1x1(x, [P["branch3x3_1"], P["branch7x7x3_1"]])
    b3 = basic_conv(b3, P["branch3x3_2"])
    b7 = basic_conv(basic_conv(basic_conv(b7, P["branch7x7x3_2"]),
                               P["branch7x7x3_3"]), P["branch7x7x3_4"])
    bp = max_pool_3x3_s2(x)
    return jnp.concatenate([b3, b7, bp], axis=-1)


def inception_e(x, P):
    b1, b3, bd = fused_1x1(x, [P["branch1x1"], P["branch3x3_1"], P["branch3x3dbl_1"]])
    b3 = jnp.concatenate([basic_conv(b3, P["branch3x3_2a"]),
                          basic_conv(b3, P["branch3x3_2b"])], axis=-1)
    bd = basic_conv(bd, P["branch3x3dbl_2"])
    bd = jnp.concatenate([basic_conv(bd, P["branch3x3dbl_3a"]),
                          basic_conv(bd, P["branch3x3dbl_3b"])], axis=-1)
    bp = basic_conv(avg_pool_3x3_s1_p1(x), P["branch_pool"])
    return jnp.concatenate([b1, b3, bd, bp], axis=-1)


def inception3_forward(x_nchw, P):
    # transform_input=False; eval mode: no aux logits, dropout = identity.
    x = jnp.transpose(x_nchw, (0, 2, 3, 1)).astype(jnp.bfloat16)   # NHWC bf16
    x = basic_conv(x, P["Conv2d_1a_3x3"])
    x = basic_conv(x, P["Conv2d_2a_3x3"])
    x = basic_conv(x, P["Conv2d_2b_3x3"])
    x = max_pool_3x3_s2(x)
    x = basic_conv(x, P["Conv2d_3b_1x1"])
    x = basic_conv(x, P["Conv2d_4a_3x3"])
    x = max_pool_3x3_s2(x)
    x = inception_a(x, P["Mixed_5b"])
    x = inception_a(x, P["Mixed_5c"])
    x = inception_a(x, P["Mixed_5d"])
    x = inception_b(x, P["Mixed_6a"])
    x = inception_c(x, P["Mixed_6b"])
    x = inception_c(x, P["Mixed_6c"])
    x = inception_c(x, P["Mixed_6d"])
    x = inception_c(x, P["Mixed_6e"])
    x = inception_d(x, P["Mixed_7a"])
    x = inception_e(x, P["Mixed_7b"])
    x = inception_e(x, P["Mixed_7c"])
    x = global_avg_pool(x)                         # [N, 2048]; dropout(eval)=id
    return linear(x, P["fc"]["w"], P["fc"]["b"])   # [N, num_classes] f32


if __name__ == "__main__":
    num_classes = 1000
    params = make_params(num_classes=num_classes, seed=42)
    x = jax.random.normal(jax.random.PRNGKey(0), (2, 3, 299, 299), jnp.float32)
    logits = inception3_forward(x, params)
    logits = jax.block_until_ready(logits)
    assert logits.shape == (2, num_classes), logits.shape
    assert bool(jnp.all(jnp.isfinite(logits)))
    print("KERNEL_OK")
</pallas_src>

<mosaic_0001>
module attributes {stable_mosaic.version = 11 : i64} {
  func.func @kernel(%arg0: i32, %arg1: i32, %arg2: i32, %arg3: memref<512x128xbf16, #tpu.memory_space<vmem>>, %arg4: memref<128x128xbf16, #tpu.memory_space<vmem>>, %arg5: memref<1x128xf32, #tpu.memory_space<vmem>>, %arg6: memref<1x128xf32, #tpu.memory_space<vmem>>, %arg7: memref<512x128xbf16, #tpu.memory_space<vmem>>, %arg8: memref<512x128xf32, #tpu.memory_space<vmem>>) attributes {dimension_semantics = [#tpu.dimension_semantics<parallel>, #tpu.dimension_semantics<parallel>, #tpu.dimension_semantics<arbitrary>], iteration_bounds = array<i64: 87, 1, 1>, scalar_prefetch = 0 : i64, scratch_operands = 1 : i64, tpu.core_type = #tpu.core_type<tc>, window_params = [{transform_indices = @transform_0, window_bounds = array<i64: 512, 128>}, {transform_indices = @transform_1, window_bounds = array<i64: 128, 128>}, {transform_indices = @transform_2, window_bounds = array<i64: 1, 128>}, {transform_indices = @transform_3, window_bounds = array<i64: 1, 128>}, {transform_indices = @transform_4, window_bounds = array<i64: 512, 128>}]} {
    %c0_i32 = arith.constant 0 : i32
    %0 = arith.cmpi eq, %arg2, %c0_i32 : i32
    %1 = arith.extui %0 : i1 to i32
    %c0_i32_0 = arith.constant 0 : i32
    %2 = arith.cmpi ne, %1, %c0_i32_0 : i32
    scf.if %2 {
      %cst_10 = arith.constant 0.000000e+00 : f32
      %12 = vector.broadcast %cst_10 : f32 to vector<512x128xf32>
      %c0_11 = arith.constant 0 : index
      %c0_12 = arith.constant 0 : index
      %13 = vector.load %arg8[%c0_11, %c0_12] : memref<512x128xf32, #tpu.memory_space<vmem>>, vector<512x128xf32>
      tpu.vector_store %arg8[%c0_11, %c0_12], %12 {strides = array<i32>} : memref<512x128xf32, #tpu.memory_space<vmem>>, vector<512x128xf32>,
    } else {
    }
    %c0 = arith.constant 0 : index
    %c0_1 = arith.constant 0 : index
    %3 = vector.load %arg8[%c0, %c0_1] : memref<512x128xf32, #tpu.memory_space<vmem>>, vector<512x128xf32>
    %c0_2 = arith.constant 0 : index
    %c0_3 = arith.constant 0 : index
    %4 = vector.load %arg3[%c0_2, %c0_3] : memref<512x128xbf16, #tpu.memory_space<vmem>>, vector<512x128xbf16>
    %c0_4 = arith.constant 0 : index
    %c0_5 = arith.constant 0 : index
    %5 = vector.load %arg4[%c0_4, %c0_5] : memref<128x128xbf16, #tpu.memory_space<vmem>>, vector<128x128xbf16>
    %cst = arith.constant dense<0.000000e+00> : vector<512x128xf32>
    %6 = tpu.matmul %4, %5, %cst {dimension_numbers = #tpu.dot_dimension_numbers<[1], [0], [0], [1], [0, 0, 1, 1], [], []>} : vector<512x128xbf16>, vector<128x128xbf16>, vector<512x128xf32> -> vector<512x128xf32>
    %7 = arith.addf %3, %6 : vector<512x128xf32>
    %c0_6 = arith.constant 0 : index
    %c0_7 = arith.constant 0 : index
    %8 = vector.load %arg8[%c0_6, %c0_7] : memref<512x128xf32, #tpu.memory_space<vmem>>, vector<512x128xf32>
    tpu.vector_store %arg8[%c0_6, %c0_7], %7 {strides = array<i32>} : memref<512x128xf32, #tpu.memory_space<vmem>>, vector<512x128xf32>,
    %c0_i32_8 = arith.constant 0 : i32
    %9 = arith.cmpi eq, %arg2, %c0_i32_8 : i32
    %10 = arith.extui %9 : i1 to i32
    %c0_i32_9 = arith.constant 0 : i32
    %11 = arith.cmpi ne, %10, %c0_i32_9 : i32
    scf.if %11 {
      %c0_10 = arith.constant 0 : index
      %c0_11 = arith.constant 0 : index
      %12 = vector.load %arg8[%c0_10, %c0_11] : memref<512x128xf32, #tpu.memory_space<vmem>>, vector<512x128xf32>
      %c0_12 = arith.constant 0 : index
      %c0_13 = arith.constant 0 : index
      %13 = vector.load %arg5[%c0_12, %c0_13] : memref<1x128xf32, #tpu.memory_space<vmem>>, vector<1x128xf32>
      %14 = vector.broadcast %13 : vector<1x128xf32> to vector<512x128xf32>
      %15 = arith.mulf %12, %14 : vector<512x128xf32>
      %c0_14 = arith.constant 0 : index
      %c0_15 = arith.constant 0 : index
      %16 = vector.load %arg6[%c0_14, %c0_15] : memref<1x128xf32, #tpu.memory_space<vmem>>, vector<1x128xf32>
      %17 = vector.broadcast %16 : vector<1x128xf32> to vector<512x128xf32>
      %18 = arith.addf %15, %17 : vector<512x128xf32>
      %cst_16 = arith.constant 0.000000e+00 : f32
      %19 = vector.broadcast %cst_16 : f32 to vector<512x128xf32>
      %20 = arith.maximumf %18, %19 : vector<512x128xf32>
      %21 = arith.truncf %20 : vector<512x128xf32> to vector<512x128xbf16>
      %c0_17 = arith.constant 0 : index
      %c0_18 = arith.constant 0 : index
      %22 = vector.load %arg7[%c0_17, %c0_18] : memref<512x128xbf16, #tpu.memory_space<vmem>>, vector<512x128xbf16>
      tpu.vector_store %arg7[%c0_17, %c0_18], %21 {strides = array<i32>} : memref<512x128xbf16, #tpu.memory_space<vmem>>, vector<512x128xbf16>,
    } else {
    }
    return
  }
  func.func @transform_0(%arg0: i32, %arg1: i32, %arg2: i32) -> (i32, i32) {
    %c0_i32 = arith.constant 0 : i32
    return %arg0, %arg2 : i32, i32
  }
  func.func @transform_1(%arg0: i32, %arg1: i32, %arg2: i32) -> (i32, i32) {
    %c0_i32 = arith.constant 0 : i32
    return %arg2, %arg1 : i32, i32
  }
  func.func @transform_2(%arg0: i32, %arg1: i32, %arg2: i32) -> (i32, i32) {
    %c0_i32 = arith.constant 0 : i32
    %c0_i32_0 = arith.constant 0 : i32
    return %c0_i32, %arg1 : i32, i32
  }
  func.func @transform_3(%arg0: i32, %arg1: i32, %arg2: i32) -> (i32, i32) {
    %c0_i32 = arith.constant 0 : i32
    %c0_i32_0 = arith.constant 0 : i32
    return %c0_i32, %arg1 : i32, i32
  }
  func.func @transform_4(%arg0: i32, %arg1: i32, %arg2: i32) -> (i32, i32) {
    %c0_i32 = arith.constant 0 : i32
    return %arg0, %arg1 : i32, i32
  }
}

</mosaic_0001>

<bundles_post_ra>
// kernel: conv_bn_relu_nhwc.1
= control target key start
LH: loop header
LB: loop body
LE: loop exit
PB: predicated region body
PF: predicated region fallthrough
CT: control target
= control target key end

     0   :  { %s2510_s15 = smov 0   ;;  %s2512_s16 = smov 0   ;;  %s2780_s0 = inlined_call_operand.vmem [shape: bf16[44544,128], index: 0, kind: input, shape index: {}]   ;;  %s2781_s1 = inlined_call_operand.vmem [shape: bf16[128,128], index: 1, kind: input, shape index: {}]   ;;  %s2782_s2 = inlined_call_operand.vmem [shape: f32[1,128], index: 2, kind: input, shape index: {}]   ;;  %s2783_s3 = inlined_call_operand.vmem [shape: f32[1,128], index: 3, kind: input, shape index: {}]   ;;  %s2784_s4 = inlined_call_operand.vmem [shape: bf16[44544,128], index: 4, kind: output, shape index: {}]  }
   0x1   :  { %s2514_s17 = smov 0  }
   0x2 LB: > { %s33_s18 = sadd.s32 1, %s2479_s16  ;;  %p1893_p0 = scmp.ge.s32.totalorder %s2483_s17, 1  ;;  %s2483_s17 = sphi %s2514_s17, %s14_s17   ;;  %s2479_s16 = sphi %s2512_s16, %s2786_s16   ;;  %s2475_s15 = sphi %s2510_s15, %s2785_s15  }
   0x3   : > { %p35_p1 = scmp.ge.s32.totalorder %s33_s18, 87  ;;  %p221_p2 = scmp.lt.s32.totalorder %s2483_s17, 88 }
   0x5   : > { %s2788_s18 = smov (%p35_p1, %s33_s18), 0  ;;  %p222_p3 = pnand %p1893_p0, %p221_p2 }
   0x6   : > { %s1894_s21 = sshll.u32 (!%p222_p3), %s2475_s15, 6 }
   0x7   : > { %225 = sbr.rel (%p222_p3) target bundleno = 309 (0x135), region = 36  ;;  %p268_p4 = scmp.lt.s32.totalorder (!%p222_p3), %s1894_s21, 5567 }
   0xc   : > { %v2421_v0 = vld [vmem:[%s2781_s1 + $0x38] sm:$0xff]   ;;  %v2422_v1 = vld [vmem:[%s2781_s1 + $0x30] sm:$0xff]   ;;  %s2790_s21 = smov (!%p268_p4, %s1894_s21), 5567  ;;  %v2423_v2 = vld [vmem:[%s2781_s1 + $0x28] sm:$0xff]  }
   0xd   : > { %2301 = vmatprep.subr.bf16.mxu0 %v2421_v0  ;;  %2381 = vmatprep.subr.bf16.mxu1 %v2421_v0  ;;  %s1895_s26 = sshll.u32 %s2790_s21, 2  ;;  %v2424_v3 = vld [vmem:[%s2781_s1 + $0x20] sm:$0xff]   ;;  %v2425_v6 = vld [vmem:[%s2781_s1 + $0x18] sm:$0xff]   ;;  %v2426_v7 = vld [vmem:[%s2781_s1 + $0x10] sm:$0xff]  }
   0xe   : > { %2302 = vmatpush3.bf16.msra.mxu0 %v2421_v0  ;;  %2389 = vmatpush3.bf16.msra.mxu1 %v2421_v0  ;;  %s2545_s29 = scalar_lea.vmem %s2780_s0, %s1895_s26  ;;  %v2427_v8 = vld [vmem:[%s2781_s1 + $0x8] sm:$0xff]   ;;  %v2428_v9 = vld [vmem:[%s2781_s1] sm:$0xff]   ;;  %s2627_s24 = scalar_lea.vmem %s2784_s4, %s1895_s26 }
   0xf   : > { %2303 = vmatprep.subr.bf16.mxu0 %v2422_v1  ;;  %2382 = vmatprep.subr.bf16.mxu1 %v2422_v1  ;;  %v2429_v4 = vld [vmem:[%s2545_s29] sm:$0xff]   ;;  %v2431_v10 = vld [vmem:[%s2545_s29 + $0x8] sm:$0xff]   ;;  %v2433_v12 = vld [vmem:[%s2545_s29 + $0x10] sm:$0xff]  }
  0x10   : > { %v2430_v5 = vld [vmem:[%s2545_s29 + $0x80] sm:$0xff]   ;;  %2317 = vmatprep.mubr.bf16.mxu0 %v2429_v4  ;;  %v2432_v11 = vld [vmem:[%s2545_s29 + $0x88] sm:$0xff]   ;;  %v2434_v13 = vld [vmem:[%s2545_s29 + $0x90] sm:$0xff]  }
  0x11   : > { %2349 = vmatprep.mubr.bf16.mxu1 %v2430_v5  ;;  %v2435_v14 = vld [vmem:[%s2545_s29 + $0x18] sm:$0xff]   ;;  %v2437_v16 = vld [vmem:[%s2545_s29 + $0x20] sm:$0xff]   ;;  %v2439_v18 = vld [vmem:[%s2545_s29 + $0x28] sm:$0xff]  }
  0x12   : > { %2304 = vmatpush3.bf16.msra.mxu0 %v2422_v1  ;;  %2390 = vmatpush3.bf16.msra.mxu1 %v2422_v1  ;;  %v2436_v15 = vld [vmem:[%s2545_s29 + $0x98] sm:$0xff]   ;;  %v2438_v17 = vld [vmem:[%s2545_s29 + $0xa0] sm:$0xff]   ;;  %v2440_v19 = vld [vmem:[%s2545_s29 + $0xa8] sm:$0xff]  }
  0x13   : > { %2305 = vmatprep.subr.bf16.mxu0 %v2423_v2  ;;  %2383 = vmatprep.subr.bf16.mxu1 %v2423_v2  ;;  %v2441_v20 = vld [vmem:[%s2545_s29 + $0x30] sm:$0xff]   ;;  %v2443_v22 = vld [vmem:[%s2545_s29 + $0x38] sm:$0xff]   ;;  %v2445_v24 = vld [vmem:[%s2545_s29 + $0x40] sm:$0xff]  }
  0x14   : > { %v2442_v21 = vld [vmem:[%s2545_s29 + $0xb0] sm:$0xff]   ;;  %v2444_v23 = vld [vmem:[%s2545_s29 + $0xb8] sm:$0xff]   ;;  %v2446_v25 = vld [vmem:[%s2545_s29 + $0xc0] sm:$0xff]  }
  0x15   : > { %v2447_v26 = vld [vmem:[%s2545_s29 + $0x48] sm:$0xff]   ;;  %v2449_v28 = vld [vmem:[%s2545_s29 + $0x50] sm:$0xff]   ;;  %v2451_v30 = vld [vmem:[%s2545_s29 + $0x58] sm:$0xff]  }
  0x16   : > { %2306 = vmatpush3.bf16.msra.mxu0 %v2423_v2  ;;  %2391 = vmatpush3.bf16.msra.mxu1 %v2423_v2  ;;  %v2448_v27 = vld [vmem:[%s2545_s29 + $0xc8] sm:$0xff]   ;;  %v2450_v29 = vld [vmem:[%s2545_s29 + $0xd0] sm:$0xff]   ;;  %v2452_v31 = vld [vmem:[%s2545_s29 + $0xd8] sm:$0xff]  }
  0x17   : > { %2307 = vmatprep.subr.bf16.mxu0 %v2424_v3  ;;  %2384 = vmatprep.subr.bf16.mxu1 %v2424_v3  ;;  %v2453_v32 = vld [vmem:[%s2545_s29 + $0x60] sm:$0xff]   ;;  %v2455_v34 = vld [vmem:[%s2545_s29 + $0x68] sm:$0xff]   ;;  %v2457_v36 = vld [vmem:[%s2545_s29 + $0x70] sm:$0xff]  }
  0x18   : > { %v2454_v33 = vld [vmem:[%s2545_s29 + $0xe0] sm:$0xff]   ;;  %v2456_v35 = vld [vmem:[%s2545_s29 + $0xe8] sm:$0xff]   ;;  %v2458_v37 = vld [vmem:[%s2545_s29 + $0xf0] sm:$0xff]  }
  0x19   : > { %v2459_v38 = vld [vmem:[%s2545_s29 + $0x78] sm:$0xff]   ;;  %v2597_v40 = vld [vmem:[%s2782_s2] ss:$0 sm:$0xff] }
  0x1a   : > { %2308 = vmatpush3.bf16.msra.mxu0 %v2424_v3  ;;  %2392 = vmatpush3.bf16.msra.mxu1 %v2424_v3  ;;  %v2460_v39 = vld [vmem:[%s2545_s29 + $0xf8] sm:$0xff]   ;;  %v2604_v45 = vld [vmem:[%s2783_s3] ss:$0 sm:$0xff] }
  0x1b   : > { %2309 = vmatprep.subr.bf16.mxu0 %v2425_v6  ;;  %2385 = vmatprep.subr.bf16.mxu1 %v2425_v6 }
  0x1e   : > { %2310 = vmatpush3.bf16.msra.mxu0 %v2425_v6  ;;  %2393 = vmatpush3.bf16.msra.mxu1 %v2425_v6 }
  0x1f   : > { %2311 = vmatprep.subr.bf16.mxu0 %v2426_v7  ;;  %2386 = vmatprep.subr.bf16.mxu1 %v2426_v7 }
  0x22   : > { %2312 = vmatpush3.bf16.msra.mxu0 %v2426_v7  ;;  %2394 = vmatpush3.bf16.msra.mxu1 %v2426_v7 }
  0x23   : > { %2313 = vmatprep.subr.bf16.mxu0 %v2427_v8  ;;  %2387 = vmatprep.subr.bf16.mxu1 %v2427_v8 }
  0x26   : > { %2314 = vmatpush3.bf16.msra.mxu0 %v2427_v8  ;;  %2395 = vmatpush3.bf16.msra.mxu1 %v2427_v8 }
  0x27   : > { %2315 = vmatprep.subr.bf16.mxu0 %v2428_v9  ;;  %2388 = vmatprep.subr.bf16.mxu1 %v2428_v9 }
  0x2a   : > { %2316 = vmatpush3.bf16.msra.mxu0 %v2428_v9  ;;  %2396 = vmatpush3.bf16.msra.mxu1 %v2428_v9 }
  0x2d   : > { %2318 = vmatmul.mubr.bf16.vlgmr.msra.gmra.mxu0 %v2431_v10  ;;  %2350 = vmatmul.mubr.bf16.vlgmr.msra.gmra.mxu1 %v2432_v11 }
  0x2e   : > { %2321 = vmatprep.mubr.bf16.mxu0 %v2433_v12  ;;  %2353 = vmatprep.mubr.bf16.mxu1 %v2434_v13 }
  0x35   : > { %2322 = vmatmul.mubr.bf16.gmra.mxu0 %v2435_v14  ;;  %2354 = vmatmul.mubr.bf16.gmra.mxu1 %v2436_v15 }
  0x36   : > { %2325 = vmatprep.mubr.bf16.mxu0 %v2437_v16  ;;  %2357 = vmatprep.mubr.bf16.mxu1 %v2438_v17 }
  0x3d   : > { %2326 = vmatmul.mubr.bf16.gmra.mxu0 %v2439_v18  ;;  %2358 = vmatmul.mubr.bf16.gmra.mxu1 %v2440_v19 }
  0x3e   : > { %2329 = vmatprep.mubr.bf16.mxu0 %v2441_v20  ;;  %2361 = vmatprep.mubr.bf16.mxu1 %v2442_v21 }
  0x45   : > { %2330 = vmatmul.mubr.bf16.gmra.mxu0 %v2443_v22  ;;  %2362 = vmatmul.mubr.bf16.gmra.mxu1 %v2444_v23 }
  0x46   : > { %2333 = vmatprep.mubr.bf16.mxu0 %v2445_v24  ;;  %2365 = vmatprep.mubr.bf16.mxu1 %v2446_v25 }
  0x4d   : > { %2334 = vmatmul.mubr.bf16.gmra.mxu0 %v2447_v26  ;;  %2366 = vmatmul.mubr.bf16.gmra.mxu1 %v2448_v27 }
  0x4e   : > { %2337 = vmatprep.mubr.bf16.mxu0 %v2449_v28  ;;  %2369 = vmatprep.mubr.bf16.mxu1 %v2450_v29 }
  0x55   : > { %2338 = vmatmul.mubr.bf16.gmra.mxu0 %v2451_v30  ;;  %2370 = vmatmul.mubr.bf16.gmra.mxu1 %v2452_v31 }
  0x56   : > { %2341 = vmatprep.mubr.bf16.mxu0 %v2453_v32  ;;  %2373 = vmatprep.mubr.bf16.mxu1 %v2454_v33 }
  0x5d   : > { %2342 = vmatmul.mubr.bf16.gmra.mxu0 %v2455_v34  ;;  %2374 = vmatmul.mubr.bf16.gmra.mxu1 %v2456_v35 }
  0x5e   : > { %2345 = vmatprep.mubr.bf16.mxu0 %v2457_v36  ;;  %2377 = vmatprep.mubr.bf16.mxu1 %v2458_v37 }
  0x65   : > { %2346 = vmatmul.mubr.bf16.gmra.mxu0 %v2459_v38  ;;  %2378 = vmatmul.mubr.bf16.gmra.mxu1 %v2460_v39 }
  0xed   : > { %v2319_v41 = vpop.f32.mrf.mxu0  ;;  %v2351_v42 = vpop.f32.mrf.mxu1 }
  0xee   : > { %v1246_v43 = vmul.f32 %v2319_v41, %v2597_v40  ;;  %v1278_v44 = vmul.f32 %v2351_v42, %v2597_v40 }
  0xef   : > { %v787_v46 = vpop.f32.mrf.mxu0  ;;  %v915_v47 = vpop.f32.mrf.mxu1 }
  0xf0   : > { %v1244_v48 = vmul.f32 %v2597_v40, %v787_v46  ;;  %v1276_v49 = vmul.f32 %v2597_v40, %v915_v47  ;;  %v1317_v52 = vadd.f32 %v2604_v45, %v1246_v43  ;;  %v1349_v53 = vadd.f32 %v2604_v45, %v1278_v44 }
  0xf1   : > { %v2320_v50 = vpop.f32.mrf.mxu0  ;;  %v2352_v51 = vpop.f32.mrf.mxu1 }
  0xf2   : > { %v1247_v54 = vmul.f32 %v2320_v50, %v2597_v40  ;;  %v1279_v55 = vmul.f32 %v2352_v51, %v2597_v40  ;;  %v1315_v58 = vadd.f32 %v2604_v45, %v1244_v48  ;;  %v1347_v59 = vadd.f32 %v2604_v45, %v1276_v49 }
  0xf3   : > { %v790_v56 = vpop.f32.mrf.mxu0  ;;  %v918_v57 = vpop.f32.mrf.mxu1  ;;  %v1381_v2 = vmax.f32 %v1317_v52, 0.0  ;;  %v1413_v3 = vmax.f32 %v1349_v53, 0.0 }
  0xf4   : > { %v1245_v60 = vmul.f32 %v2597_v40, %v790_v56  ;;  %v1277_v61 = vmul.f32 %v2597_v40, %v918_v57  ;;  %v1318_v62 = vadd.f32 %v2604_v45, %v1247_v54  ;;  %v1350_v63 = vadd.f32 %v2604_v45, %v1279_v55 }
  0xf5   : > { %v2323_v0 = vpop.f32.mrf.mxu0  ;;  %v2355_v1 = vpop.f32.mrf.mxu1  ;;  %v1379_v12 = vmax.f32 %v1315_v58, 0.0  ;;  %v1411_v13 = vmax.f32 %v1347_v59, 0.0 }
  0xf6   : > { %v1316_v4 = vadd.f32 %v2604_v45, %v1245_v60  ;;  %v1348_v5 = vadd.f32 %v2604_v45, %v1277_v61  ;;  %v1382_v6 = vmax.f32 %v1318_v62, 0.0  ;;  %v1414_v7 = vmax.f32 %v1350_v63, 0.0 }
  0xf7   : > { %v1250_v8 = vmul.f32 %v2323_v0, %v2597_v40  ;;  %v1282_v9 = vmul.f32 %v2355_v1, %v2597_v40  ;;  %v803_v10 = vpop.f32.mrf.mxu0  ;;  %v931_v11 = vpop.f32.mrf.mxu1 }
  0xf8   : > { %v1380_v14 = vmax.f32 %v1316_v4, 0.0  ;;  %v1412_v15 = vmax.f32 %v1348_v5, 0.0  ;;  %v2078_v16 = vpack.c.bf16 %v1382_v6, %v1381_v2  ;;  %v2158_v17 = vpack.c.bf16 %v1414_v7, %v1413_v3 }
  0xf9   : > { %v1248_v18 = vmul.f32 %v2597_v40, %v803_v10  ;;  %v1280_v19 = vmul.f32 %v2597_v40, %v931_v11  ;;  %v2324_v20 = vpop.f32.mrf.mxu0  ;;  %v2356_v21 = vpop.f32.mrf.mxu1  ;;  %v1321_v24 = vadd.f32 %v2604_v45, %v1250_v8  ;;  %v1353_v25 = vadd.f32 %v2604_v45, %v1282_v9 }
  0xfa   : > { %v2073_v22 = vpack.c.bf16 %v1380_v14, %v1379_v12  ;;  %v2153_v23 = vpack.c.bf16 %v1412_v15, %v1411_v13  ;;  %2230 = vst [vmem:[%s2627_s24 + $0x8] sm:$0xff] %v2078_v16   ;;  %2246 = vst [vmem:[%s2627_s24 + $0x88] sm:$0xff] %v2158_v17   ;;  %v1251_v26 = vmul.f32 %v2324_v20, %v2597_v40 }
  0xfb   : > { %v1283_v27 = vmul.f32 %v2356_v21, %v2597_v40  ;;  %v806_v28 = vpop.f32.mrf.mxu0  ;;  %v934_v29 = vpop.f32.mrf.mxu1  ;;  %v1319_v30 = vadd.f32 %v2604_v45, %v1248_v18  ;;  %v1351_v31 = vadd.f32 %v2604_v45, %v1280_v19  ;;  %v1385_v43 = vmax.f32 %v1321_v24, 0.0 }
  0xfc   : > { %2074 = vst [vmem:[%s2627_s24] sm:$0xff] %v2073_v22   ;;  %2245 = vst [vmem:[%s2627_s24 + $0x80] sm:$0xff] %v2153_v23   ;;  %v1249_v32 = vmul.f32 %v2597_v40, %v806_v28  ;;  %v1281_v33 = vmul.f32 %v2597_v40, %v934_v29  ;;  %v1322_v34 = vadd.f32 %v2604_v45, %v1251_v26  ;;  %v1417_v44 = vmax.f32 %v1353_v25, 0.0 }
  0xfd   : > { %v1354_v35 = vadd.f32 %v2604_v45, %v1283_v27  ;;  %v2327_v36 = vpop.f32.mrf.mxu0  ;;  %v2359_v37 = vpop.f32.mrf.mxu1  ;;  %v1383_v50 = vmax.f32 %v1319_v30, 0.0  ;;  %v1415_v51 = vmax.f32 %v1351_v31, 0.0 }
  0xfe   : > { %v1320_v38 = vadd.f32 %v2604_v45, %v1249_v32  ;;  %v1352_v39 = vadd.f32 %v2604_v45, %v1281_v33  ;;  %v1254_v41 = vmul.f32 %v2327_v36, %v2597_v40  ;;  %v1286_v42 = vmul.f32 %v2359_v37, %v2597_v40 }
  0xff   : > { %v1386_v46 = vmax.f32 %v1322_v34, 0.0  ;;  %v1418_v47 = vmax.f32 %v1354_v35, 0.0  ;;  %v819_v48 = vpop.f32.mrf.mxu0  ;;  %v947_v49 = vpop.f32.mrf.mxu1 }
 0x100   : > { %v1384_v52 = vmax.f32 %v1320_v38, 0.0  ;;  %v1416_v53 = vmax.f32 %v1352_v39, 0.0  ;;  %v1252_v56 = vmul.f32 %v2597_v40, %v819_v48  ;;  %v1284_v57 = vmul.f32 %v2597_v40, %v947_v49 }
 0x101   : > { %v2088_v54 = vpack.c.bf16 %v1386_v46, %v1385_v43  ;;  %v2168_v55 = vpack.c.bf16 %v1418_v47, %v1417_v44  ;;  %v2328_v58 = vpop.f32.mrf.mxu0  ;;  %v2360_v59 = vpop.f32.mrf.mxu1  ;;  %v1325_v62 = vadd.f32 %v2604_v45, %v1254_v41  ;;  %v1357_v63 = vadd.f32 %v2604_v45, %v1286_v42 }
 0x102   : > { %v2083_v60 = vpack.c.bf16 %v1384_v52, %v1383_v50  ;;  %v2163_v61 = vpack.c.bf16 %v1416_v53, %v1415_v51  ;;  %v1255_v0 = vmul.f32 %v2328_v58, %v2597_v40  ;;  %v1287_v1 = vmul.f32 %v2360_v59, %v2597_v40 }
 0x103   : > { %2232 = vst [vmem:[%s2627_s24 + $0x18] sm:$0xff] %v2088_v54   ;;  %2248 = vst [vmem:[%s2627_s24 + $0x98] sm:$0xff] %v2168_v55   ;;  %v822_v2 = vpop.f32.mrf.mxu0  ;;  %v950_v3 = vpop.f32.mrf.mxu1  ;;  %v1323_v4 = vadd.f32 %v2604_v45, %v1252_v56  ;;  %v1355_v5 = vadd.f32 %v2604_v45, %v1284_v57  ;;  %v1389_v12 = vmax.f32 %v1325_v62, 0.0  ;;  %v1421_v13 = vmax.f32 %v1357_v63, 0.0 }
 0x104   : > { %2231 = vst [vmem:[%s2627_s24 + $0x10] sm:$0xff] %v2083_v60   ;;  %2247 = vst [vmem:[%s2627_s24 + $0x90] sm:$0xff] %v2163_v61   ;;  %v1253_v6 = vmul.f32 %v2597_v40, %v822_v2  ;;  %v1285_v7 = vmul.f32 %v2597_v40, %v950_v3  ;;  %v1326_v8 = vadd.f32 %v2604_v45, %v1255_v0 }
 0x105   : > { %v1358_v9 = vadd.f32 %v2604_v45, %v1287_v1  ;;  %v2331_v10 = vpop.f32.mrf.mxu0  ;;  %v2363_v11 = vpop.f32.mrf.mxu1  ;;  %v1387_v22 = vmax.f32 %v1323_v4, 0.0  ;;  %v1419_v23 = vmax.f32 %v1355_v5, 0.0 }
 0x106   : > { %v1324_v14 = vadd.f32 %v2604_v45, %v1253_v6  ;;  %v1356_v15 = vadd.f32 %v2604_v45, %v1285_v7  ;;  %v1390_v16 = vmax.f32 %v1326_v8, 0.0  ;;  %v1258_v18 = vmul.f32 %v2331_v10, %v2597_v40 }
 0x107   : > { %v1422_v17 = vmax.f32 %v1358_v9, 0.0  ;;  %v1290_v19 = vmul.f32 %v2363_v11, %v2597_v40  ;;  %v835_v20 = vpop.f32.mrf.mxu0  ;;  %v963_v21 = vpop.f32.mrf.mxu1 }
 0x108   : > { %v1388_v24 = vmax.f32 %v1324_v14, 0.0  ;;  %v1420_v25 = vmax.f32 %v1356_v15, 0.0  ;;  %v2098_v26 = vpack.c.bf16 %v1390_v16, %v1389_v12  ;;  %v1256_v28 = vmul.f32 %v2597_v40, %v835_v20 }
 0x109   : > { %v2178_v27 = vpack.c.bf16 %v1422_v17, %v1421_v13  ;;  %v1288_v29 = vmul.f32 %v2597_v40, %v963_v21  ;;  %v2332_v30 = vpop.f32.mrf.mxu0  ;;  %v2364_v31 = vpop.f32.mrf.mxu1  ;;  %v1329_v34 = vadd.f32 %v2604_v45, %v1258_v18  ;;  %v1361_v35 = vadd.f32 %v2604_v45, %v1290_v19 }
 0x10a   : > { %v2093_v32 = vpack.c.bf16 %v1388_v24, %v1387_v22  ;;  %v2173_v33 = vpack.c.bf16 %v1420_v25, %v1419_v23  ;;  %2234 = vst [vmem:[%s2627_s24 + $0x28] sm:$0xff] %v2098_v26   ;;  %v1259_v36 = vmul.f32 %v2332_v30, %v2597_v40  ;;  %v1291_v37 = vmul.f32 %v2364_v31, %v2597_v40 }
 0x10b   : > { %2250 = vst [vmem:[%s2627_s24 + $0xa8] sm:$0xff] %v2178_v27   ;;  %v838_v38 = vpop.f32.mrf.mxu0  ;;  %v966_v39 = vpop.f32.mrf.mxu1  ;;  %v1327_v41 = vadd.f32 %v2604_v45, %v1256_v28  ;;  %v1359_v42 = vadd.f32 %v2604_v45, %v1288_v29  ;;  %v1393_v54 = vmax.f32 %v1329_v34, 0.0  ;;  %v1425_v55 = vmax.f32 %v1361_v35, 0.0 }
 0x10c   : > { %2233 = vst [vmem:[%s2627_s24 + $0x20] sm:$0xff] %v2093_v32   ;;  %2249 = vst [vmem:[%s2627_s24 + $0xa0] sm:$0xff] %v2173_v33   ;;  %v1257_v43 = vmul.f32 %v2597_v40, %v838_v38  ;;  %v1289_v44 = vmul.f32 %v2597_v40, %v966_v39  ;;  %v1330_v46 = vadd.f32 %v2604_v45, %v1259_v36 }
 0x10d   : > { %v1362_v47 = vadd.f32 %v2604_v45, %v1291_v37  ;;  %v2335_v48 = vpop.f32.mrf.mxu0  ;;  %v2367_v49 = vpop.f32.mrf.mxu1  ;;  %v1391_v60 = vmax.f32 %v1327_v41, 0.0  ;;  %v1423_v61 = vmax.f32 %v1359_v42, 0.0 }
 0x10e   : > { %v1328_v50 = vadd.f32 %v2604_v45, %v1257_v43  ;;  %v1360_v51 = vadd.f32 %v2604_v45, %v1289_v44  ;;  %v1262_v52 = vmul.f32 %v2335_v48, %v2597_v40  ;;  %v1294_v53 = vmul.f32 %v2367_v49, %v2597_v40 }
 0x10f   : > { %v1394_v56 = vmax.f32 %v1330_v46, 0.0  ;;  %v1426_v57 = vmax.f32 %v1362_v47, 0.0  ;;  %v851_v58 = vpop.f32.mrf.mxu0  ;;  %v979_v59 = vpop.f32.mrf.mxu1 }
 0x110   : > { %v1392_v62 = vmax.f32 %v1328_v50, 0.0  ;;  %v1424_v63 = vmax.f32 %v1360_v51, 0.0  ;;  %v1260_v2 = vmul.f32 %v2597_v40, %v851_v58  ;;  %v1292_v3 = vmul.f32 %v2597_v40, %v979_v59 }
 0x111   : > { %v2108_v0 = vpack.c.bf16 %v1394_v56, %v1393_v54  ;;  %v2188_v1 = vpack.c.bf16 %v1426_v57, %v1425_v55  ;;  %v2336_v4 = vpop.f32.mrf.mxu0  ;;  %v2368_v5 = vpop.f32.mrf.mxu1  ;;  %v1333_v8 = vadd.f32 %v2604_v45, %v1262_v52  ;;  %v1365_v9 = vadd.f32 %v2604_v45, %v1294_v53 }
 0x112   : > { %v2103_v6 = vpack.c.bf16 %v1392_v62, %v1391_v60  ;;  %v2183_v7 = vpack.c.bf16 %v1424_v63, %v1423_v61  ;;  %v1263_v10 = vmul.f32 %v2336_v4, %v2597_v40  ;;  %v1295_v11 = vmul.f32 %v2368_v5, %v2597_v40 }
 0x113   : > { %2236 = vst [vmem:[%s2627_s24 + $0x38] sm:$0xff] %v2108_v0   ;;  %2252 = vst [vmem:[%s2627_s24 + $0xb8] sm:$0xff] %v2188_v1   ;;  %v854_v12 = vpop.f32.mrf.mxu0  ;;  %v982_v13 = vpop.f32.mrf.mxu1  ;;  %v1331_v14 = vadd.f32 %v2604_v45, %v1260_v2  ;;  %v1363_v15 = vadd.f32 %v2604_v45, %v1292_v3  ;;  %v1397_v22 = vmax.f32 %v1333_v8, 0.0  ;;  %v1429_v23 = vmax.f32 %v1365_v9, 0.0 }
 0x114   : > { %2235 = vst [vmem:[%s2627_s24 + $0x30] sm:$0xff] %v2103_v6   ;;  %2251 = vst [vmem:[%s2627_s24 + $0xb0] sm:$0xff] %v2183_v7   ;;  %v1261_v16 = vmul.f32 %v2597_v40, %v854_v12  ;;  %v1293_v17 = vmul.f32 %v2597_v40, %v982_v13  ;;  %v1334_v18 = vadd.f32 %v2604_v45, %v1263_v10 }
 0x115   : > { %v1366_v19 = vadd.f32 %v2604_v45, %v1295_v11  ;;  %v2339_v20 = vpop.f32.mrf.mxu0  ;;  %v2371_v21 = vpop.f32.mrf.mxu1  ;;  %v1395_v32 = vmax.f32 %v1331_v14, 0.0  ;;  %v1427_v33 = vmax.f32 %v1363_v15, 0.0 }
 0x116   : > { %v1332_v24 = vadd.f32 %v2604_v45, %v1261_v16  ;;  %v1364_v25 = vadd.f32 %v2604_v45, %v1293_v17  ;;  %v1398_v26 = vmax.f32 %v1334_v18, 0.0  ;;  %v1266_v28 = vmul.f32 %v2339_v20, %v2597_v40 }
 0x117   : > { %v1430_v27 = vmax.f32 %v1366_v19, 0.0  ;;  %v1298_v29 = vmul.f32 %v2371_v21, %v2597_v40  ;;  %v867_v30 = vpop.f32.mrf.mxu0  ;;  %v995_v31 = vpop.f32.mrf.mxu1 }
 0x118   : > { %v1396_v34 = vmax.f32 %v1332_v24, 0.0  ;;  %v1428_v35 = vmax.f32 %v1364_v25, 0.0  ;;  %v2118_v36 = vpack.c.bf16 %v1398_v26, %v1397_v22  ;;  %v1264_v38 = vmul.f32 %v2597_v40, %v867_v30 }
 0x119   : > { %v2198_v37 = vpack.c.bf16 %v1430_v27, %v1429_v23  ;;  %v1296_v39 = vmul.f32 %v2597_v40, %v995_v31  ;;  %v2340_v41 = vpop.f32.mrf.mxu0  ;;  %v2372_v42 = vpop.f32.mrf.mxu1  ;;  %v1337_v46 = vadd.f32 %v2604_v45, %v1266_v28  ;;  %v1369_v47 = vadd.f32 %v2604_v45, %v1298_v29 }
 0x11a   : > { %v2113_v43 = vpack.c.bf16 %v1396_v34, %v1395_v32  ;;  %v2193_v44 = vpack.c.bf16 %v1428_v35, %v1427_v33  ;;  %2238 = vst [vmem:[%s2627_s24 + $0x48] sm:$0xff] %v2118_v36   ;;  %v1267_v48 = vmul.f32 %v2340_v41, %v2597_v40  ;;  %v1299_v49 = vmul.f32 %v2372_v42, %v2597_v40 }
 0x11b   : > { %2254 = vst [vmem:[%s2627_s24 + $0xc8] sm:$0xff] %v2198_v37   ;;  %v870_v50 = vpop.f32.mrf.mxu0  ;;  %v998_v51 = vpop.f32.mrf.mxu1  ;;  %v1335_v52 = vadd.f32 %v2604_v45, %v1264_v38  ;;  %v1367_v53 = vadd.f32 %v2604_v45, %v1296_v39  ;;  %v1401_v0 = vmax.f32 %v1337_v46, 0.0  ;;  %v1433_v1 = vmax.f32 %v1369_v47, 0.0 }
 0x11c   : > { %2237 = vst [vmem:[%s2627_s24 + $0x40] sm:$0xff] %v2113_v43   ;;  %2253 = vst [vmem:[%s2627_s24 + $0xc0] sm:$0xff] %v2193_v44   ;;  %v1265_v54 = vmul.f32 %v2597_v40, %v870_v50  ;;  %v1297_v55 = vmul.f32 %v2597_v40, %v998_v51  ;;  %v1338_v56 = vadd.f32 %v2604_v45, %v1267_v48 }
 0x11d   : > { %v1370_v57 = vadd.f32 %v2604_v45, %v1299_v49  ;;  %v2343_v58 = vpop.f32.mrf.mxu0  ;;  %v2375_v59 = vpop.f32.mrf.mxu1  ;;  %v1399_v6 = vmax.f32 %v1335_v52, 0.0  ;;  %v1431_v7 = vmax.f32 %v1367_v53, 0.0 }
 0x11e   : > { %v1336_v60 = vadd.f32 %v2604_v45, %v1265_v54  ;;  %v1368_v61 = vadd.f32 %v2604_v45, %v1297_v55  ;;  %v1270_v62 = vmul.f32 %v2343_v58, %v2597_v40  ;;  %v1302_v63 = vmul.f32 %v2375_v59, %v2597_v40 }
 0x11f   : > { %v1402_v2 = vmax.f32 %v1338_v56, 0.0  ;;  %v1434_v3 = vmax.f32 %v1370_v57, 0.0  ;;  %v883_v4 = vpop.f32.mrf.mxu0  ;;  %v1011_v5 = vpop.f32.mrf.mxu1 }
 0x120   : > { %v1400_v8 = vmax.f32 %v1336_v60, 0.0  ;;  %v1432_v9 = vmax.f32 %v1368_v61, 0.0  ;;  %v1268_v12 = vmul.f32 %v2597_v40, %v883_v4  ;;  %v1300_v13 = vmul.f32 %v2597_v40, %v1011_v5 }
 0x121   : > { %v2128_v10 = vpack.c.bf16 %v1402_v2, %v1401_v0  ;;  %v2208_v11 = vpack.c.bf16 %v1434_v3, %v1433_v1  ;;  %v2344_v14 = vpop.f32.mrf.mxu0  ;;  %v2376_v15 = vpop.f32.mrf.mxu1  ;;  %v1341_v18 = vadd.f32 %v2604_v45, %v1270_v62  ;;  %v1373_v19 = vadd.f32 %v2604_v45, %v1302_v63 }
 0x122   : > { %v2123_v16 = vpack.c.bf16 %v1400_v8, %v1399_v6  ;;  %v2203_v17 = vpack.c.bf16 %v1432_v9, %v1431_v7  ;;  %v1271_v20 = vmul.f32 %v2344_v14, %v2597_v40  ;;  %v1303_v21 = vmul.f32 %v2376_v15, %v2597_v40 }
 0x123   : > { %2240 = vst [vmem:[%s2627_s24 + $0x58] sm:$0xff] %v2128_v10   ;;  %2256 = vst [vmem:[%s2627_s24 + $0xd8] sm:$0xff] %v2208_v11   ;;  %v886_v22 = vpop.f32.mrf.mxu0  ;;  %v1014_v23 = vpop.f32.mrf.mxu1  ;;  %v1339_v24 = vadd.f32 %v2604_v45, %v1268_v12  ;;  %v1371_v25 = vadd.f32 %v2604_v45, %v1300_v13  ;;  %v1405_v32 = vmax.f32 %v1341_v18, 0.0  ;;  %v1437_v33 = vmax.f32 %v1373_v19, 0.0 }
 0x124   : > { %2239 = vst [vmem:[%s2627_s24 + $0x50] sm:$0xff] %v2123_v16   ;;  %2255 = vst [vmem:[%s2627_s24 + $0xd0] sm:$0xff] %v2203_v17   ;;  %v1269_v26 = vmul.f32 %v2597_v40, %v886_v22  ;;  %v1301_v27 = vmul.f32 %v2597_v40, %v1014_v23  ;;  %v1342_v28 = vadd.f32 %v2604_v45, %v1271_v20 }
 0x125   : > { %v1374_v29 = vadd.f32 %v2604_v45, %v1303_v21  ;;  %v2347_v30 = vpop.f32.mrf.mxu0  ;;  %v2379_v31 = vpop.f32.mrf.mxu1  ;;  %v1403_v43 = vmax.f32 %v1339_v24, 0.0  ;;  %v1435_v44 = vmax.f32 %v1371_v25, 0.0 }
 0x126   : > { %v1340_v34 = vadd.f32 %v2604_v45, %v1269_v26  ;;  %v1372_v35 = vadd.f32 %v2604_v45, %v1301_v27  ;;  %v1406_v36 = vmax.f32 %v1342_v28, 0.0  ;;  %v1274_v38 = vmul.f32 %v2347_v30, %v2597_v40 }
 0x127   : > { %v1438_v37 = vmax.f32 %v1374_v29, 0.0  ;;  %v1306_v39 = vmul.f32 %v2379_v31, %v2597_v40  ;;  %v899_v41 = vpop.f32.mrf.mxu0  ;;  %v1027_v42 = vpop.f32.mrf.mxu1 }
 0x128   : > { %v1404_v46 = vmax.f32 %v1340_v34, 0.0  ;;  %v1436_v47 = vmax.f32 %v1372_v35, 0.0  ;;  %v2138_v48 = vpack.c.bf16 %v1406_v36, %v1405_v32  ;;  %v1272_v50 = vmul.f32 %v2597_v40, %v899_v41 }
 0x129   : > { %v2218_v49 = vpack.c.bf16 %v1438_v37, %v1437_v33  ;;  %v1304_v51 = vmul.f32 %v2597_v40, %v1027_v42  ;;  %v2348_v52 = vpop.f32.mrf.mxu0  ;;  %v2380_v53 = vpop.f32.mrf.mxu1  ;;  %v1345_v56 = vadd.f32 %v2604_v45, %v1274_v38  ;;  %v1377_v57 = vadd.f32 %v2604_v45, %v1306_v39 }
 0x12a   : > { %v2133_v54 = vpack.c.bf16 %v1404_v46, %v1403_v43  ;;  %v2213_v55 = vpack.c.bf16 %v1436_v47, %v1435_v44  ;;  %2242 = vst [vmem:[%s2627_s24 + $0x68] sm:$0xff] %v2138_v48   ;;  %v1275_v58 = vmul.f32 %v2348_v52, %v2597_v40  ;;  %v1307_v59 = vmul.f32 %v2380_v53, %v2597_v40 }
 0x12b   : > { %2258 = vst [vmem:[%s2627_s24 + $0xe8] sm:$0xff] %v2218_v49   ;;  %v902_v60 = vpop.f32.mrf.mxu0  ;;  %v1030_v61 = vpop.f32.mrf.mxu1  ;;  %v1343_v62 = vadd.f32 %v2604_v45, %v1272_v50  ;;  %v1375_v63 = vadd.f32 %v2604_v45, %v1304_v51  ;;  %v1409_v6 = vmax.f32 %v1345_v56, 0.0  ;;  %v1441_v7 = vmax.f32 %v1377_v57, 0.0 }
 0x12c   : > { %2241 = vst [vmem:[%s2627_s24 + $0x60] sm:$0xff] %v2133_v54   ;;  %2257 = vst [vmem:[%s2627_s24 + $0xe0] sm:$0xff] %v2213_v55   ;;  %v1273_v0 = vmul.f32 %v2597_v40, %v902_v60  ;;  %v1305_v1 = vmul.f32 %v2597_v40, %v1030_v61  ;;  %v1346_v2 = vadd.f32 %v2604_v45, %v1275_v58 }
 0x12d   : > { %v1378_v3 = vadd.f32 %v2604_v45, %v1307_v59  ;;  %v1407_v10 = vmax.f32 %v1343_v62, 0.0  ;;  %v1439_v11 = vmax.f32 %v1375_v63, 0.0 }
 0x12e   : > { %v1344_v4 = vadd.f32 %v2604_v45, %v1273_v0  ;;  %v1376_v5 = vadd.f32 %v2604_v45, %v1305_v1  ;;  %v1410_v8 = vmax.f32 %v1346_v2, 0.0 }
 0x12f   : > { %v1442_v9 = vmax.f32 %v1378_v3, 0.0 }
 0x130   : > { %v1408_v12 = vmax.f32 %v1344_v4, 0.0  ;;  %v1440_v40 = vmax.f32 %v1376_v5, 0.0  ;;  %v2148_v13 = vpack.c.bf16 %v1410_v8, %v1409_v6 }
 0x131   : > { %v2228_v14 = vpack.c.bf16 %v1442_v9, %v1441_v7 }
 0x132   : > { %v2143_v15 = vpack.c.bf16 %v1408_v12, %v1407_v10  ;;  %v2223_v16 = vpack.c.bf16 %v1440_v40, %v1439_v11  ;;  %2244 = vst [vmem:[%s2627_s24 + $0x78] sm:$0xff] %v2148_v13  }
 0x133   : > { %2260 = vst [vmem:[%s2627_s24 + $0xf8] sm:$0xff] %v2228_v14  }
 0x134   : > { %2243 = vst [vmem:[%s2627_s24 + $0x70] sm:$0xff] %v2143_v15   ;;  %2259 = vst [vmem:[%s2627_s24 + $0xf0] sm:$0xff] %v2223_v16  }
 0x135 PF: > { %s14_s17 = sadd.s32 1, %s2483_s17   ;;  %s2785_s15 = smov %s2479_s16 }
 0x136   : > { %p11_p5 = scmp.ge.s32.totalorder %s14_s17, 89   ;;  %s2786_s16 = smov %s2788_s18 }
 0x138   :  { %13 = sbr.rel (!%p11_p5) target bundleno = 2 (0x2), region = 83 }

</bundles_post_ra>
